<compile_context>
chip_gen: v5e
topology: v5e:2x2
jax: 0.10.0
libtpu: 0.0.40
codegen_flags: <defaults>
</compile_context>

<pallas_src>
import functools

import jax
import jax.numpy as jnp
from jax import lax
from jax.experimental import pallas as pl
from jax.experimental.pallas import tpu as pltpu


def _round_up(x, m):
    return ((x + m - 1) // m) * m


def _mlp_kernel(x_ref, w_ref, b_ref, o_ref):
    # x_ref: (1, C, tn)   activation tile, channel on sublanes, N on lanes
    # w_ref: (C, Ep)      VMEM-resident weight (transposed + lane-padded)
    # b_ref: (1, Ep)      VMEM-resident bias (f32, lane-padded)
    # o_ref: (1, tn, Ep)  output tile, lane-dense (Ep multiple of 128)
    x = x_ref[0]                                         # (C, tn)
    acc = lax.dot_general(
        x, w_ref[...],
        dimension_numbers=(((0,), (0,)), ((), ())),      # contract C on both sides
        preferred_element_type=jnp.float32,              # f32 MXU accumulation
    )                                                    # (tn, Ep)
    acc = acc + b_ref[...].astype(jnp.float32)           # f32 bias add (VPU-safe)
    o_ref[0] = acc.astype(o_ref.dtype)


def _choose_tn(n, c, e_pad, itemsize, *, max_tn=1024, budget_bytes=36 << 20):
    """Largest lane tile (multiple of 128) whose pipeline buffers fit the budget."""
    n_pad = _round_up(n, 128)
    tn = _round_up(min(max_tn, n_pad), 128)
    while tn > 128:
        need = (2 * c * tn * itemsize          # double-buffered x tiles
                + 2 * tn * e_pad * itemsize    # double-buffered output tiles
                + 2 * c * e_pad * itemsize     # weight (worst case 2 buffers)
                + 2 * e_pad * 4)               # bias (f32)
        if need <= budget_bytes:
            break
        tn //= 2
    return max(tn, 128)


@functools.partial(jax.jit, static_argnames=("tn",))
def mlp_forward(x_nchw, weight, bias, *, tn=None):
    """x_nchw: (B, C, H, W); weight: (E, C) (PyTorch Linear layout); bias: (E,).

    Returns (B, H*W, E), matching `x.flatten(2).transpose(1, 2) @ W.T + b`.
    """
    B, C, H, W = x_nchw.shape
    E = weight.shape[0]
    N = H * W

    Ep = _round_up(E, 128)                    # lane-dense output width

    # Free, row-major reshape: NCHW -> (B, C, N). No activation transpose.
    x_cn = x_nchw.reshape(B, C, N)

    # Tiny (C x E) weight prep: transpose to (C, E) and zero-pad to (C, Ep).
    w = jnp.pad(weight.T.astype(x_cn.dtype), ((0, 0), (0, Ep - E)))
    b = jnp.pad(bias.astype(jnp.float32), (0, Ep - E)).reshape(1, Ep)

    itemsize = jnp.dtype(x_cn.dtype).itemsize
    if tn is None:
        tn = _choose_tn(N, C, Ep, itemsize)
    n_tiles = pl.cdiv(N, tn)

    cost = pl.CostEstimate(
        flops=2 * B * N * C * Ep,
        transcendentals=0,
        bytes_accessed=B * N * C * itemsize + B * N * Ep * itemsize
        + C * Ep * itemsize + Ep * 4,
    )

    out = pl.pallas_call(
        _mlp_kernel,
        out_shape=jax.ShapeDtypeStruct((B, N, Ep), x_cn.dtype),
        grid_spec=pltpu.PrefetchScalarGridSpec(
            num_scalar_prefetch=0,
            grid=(B, n_tiles),
            in_specs=[
                pl.BlockSpec((1, C, tn), lambda bi, ni: (bi, 0, ni)),
                pl.BlockSpec((C, Ep), lambda bi, ni: (0, 0)),   # VMEM-resident
                pl.BlockSpec((1, Ep), lambda bi, ni: (0, 0)),   # VMEM-resident
            ],
            out_specs=pl.BlockSpec((1, tn, Ep), lambda bi, ni: (bi, ni, 0)),
        ),
        compiler_params=pltpu.CompilerParams(
            dimension_semantics=("parallel", "parallel"),
            vmem_limit_bytes=48 << 20,
        ),
        cost_estimate=cost,
    )(x_cn, w, b)

    if Ep != E:                               # drop zero-padded embedding columns
        out = out[..., :E]
    return out


if __name__ == "__main__":
    # Small shapes consistent with the module: input_dim=C=4, embed_dim=E=32.
    B, C, H, W = 2, 4, 16, 16
    E = 32

    key = jax.random.PRNGKey(0)
    kx, kw, kb = jax.random.split(key, 3)

    x = jax.random.normal(kx, (B, C, H, W), dtype=jnp.float32)
    # Deterministic PyTorch-Linear-style init: U(-1/sqrt(C), 1/sqrt(C))
    bound = 1.0 / jnp.sqrt(jnp.float32(C))
    weight = jax.random.uniform(kw, (E, C), minval=-bound, maxval=bound,
                                dtype=jnp.float32)
    bias = jax.random.uniform(kb, (E,), minval=-bound, maxval=bound,
                              dtype=jnp.float32)

    out = mlp_forward(x, weight, bias)
    out = jax.block_until_ready(out)

    # Reference check in plain JAX (same math as the PyTorch forward).
    x_seq = jnp.transpose(x.reshape(B, C, H * W), (0, 2, 1))
    ref = x_seq @ weight.T + bias
    assert out.shape == (B, H * W, E), out.shape
    assert jnp.allclose(out, ref, atol=1e-5, rtol=1e-5)

    print("KERNEL_OK")
</pallas_src>

<mosaic_0001>
module attributes {stable_mosaic.version = 11 : i64} {
  func.func @_mlp_kernel(%arg0: i32, %arg1: i32, %arg2: memref<1x4x256xf32, #tpu.memory_space<vmem>>, %arg3: memref<4x128xf32, #tpu.memory_space<vmem>>, %arg4: memref<1x128xf32, #tpu.memory_space<vmem>>, %arg5: memref<1x256x128xf32, #tpu.memory_space<vmem>>) attributes {dimension_semantics = [#tpu.dimension_semantics<parallel>, #tpu.dimension_semantics<parallel>], iteration_bounds = array<i64: 2, 1>, scalar_prefetch = 0 : i64, scratch_operands = 0 : i64, tpu.core_type = #tpu.core_type<tc>, window_params = [{transform_indices = @transform_0, window_bounds = array<i64: 1, 4, 256>}, {pipeline_mode = #tpu.pipeline_mode<synchronous>, transform_indices = @transform_1, window_bounds = array<i64: 4, 128>}, {pipeline_mode = #tpu.pipeline_mode<synchronous>, transform_indices = @transform_2, window_bounds = array<i64: 1, 128>}, {transform_indices = @transform_3, window_bounds = array<i64: 1, 256, 128>}]} {
    %c0 = arith.constant 0 : index
    %c0_0 = arith.constant 0 : index
    %c0_1 = arith.constant 0 : index
    %0 = vector.load %arg2[%c0, %c0_0, %c0_1] : memref<1x4x256xf32, #tpu.memory_space<vmem>>, vector<1x4x256xf32>
    %1 = vector.shape_cast %0 : vector<1x4x256xf32> to vector<4x256xf32>
    %c0_2 = arith.constant 0 : index
    %c0_3 = arith.constant 0 : index
    %2 = vector.load %arg3[%c0_2, %c0_3] : memref<4x128xf32, #tpu.memory_space<vmem>>, vector<4x128xf32>
    %cst = arith.constant dense<0.000000e+00> : vector<256x128xf32>
    %3 = tpu.matmul %1, %2, %cst {dimension_numbers = #tpu.dot_dimension_numbers<[0], [0], [1], [1], [0, 1, 1, 1], [], []>} : vector<4x256xf32>, vector<4x128xf32>, vector<256x128xf32> -> vector<256x128xf32>
    %c0_4 = arith.constant 0 : index
    %c0_5 = arith.constant 0 : index
    %4 = vector.load %arg4[%c0_4, %c0_5] : memref<1x128xf32, #tpu.memory_space<vmem>>, vector<1x128xf32>
    %5 = vector.broadcast %4 : vector<1x128xf32> to vector<256x128xf32>
    %6 = arith.addf %3, %5 : vector<256x128xf32>
    %c0_6 = arith.constant 0 : index
    %c0_7 = arith.constant 0 : index
    %c0_8 = arith.constant 0 : index
    %7 = vector.load %arg5[%c0_6, %c0_7, %c0_8] : memref<1x256x128xf32, #tpu.memory_space<vmem>>, vector<1x256x128xf32>
    %8 = vector.shape_cast %7 : vector<1x256x128xf32> to vector<256x128xf32>
    %9 = vector.shape_cast %6 : vector<256x128xf32> to vector<1x256x128xf32>
    tpu.vector_store %arg5[%c0_6, %c0_7, %c0_8], %9 {strides = array<i32>} : memref<1x256x128xf32, #tpu.memory_space<vmem>>, vector<1x256x128xf32>,
    return
  }
  func.func @transform_0(%arg0: i32, %arg1: i32) -> (i32, i32, i32) {
    %c0_i32 = arith.constant 0 : i32
    %c0_i32_0 = arith.constant 0 : i32
    return %arg0, %c0_i32, %arg1 : i32, i32, i32
  }
  func.func @transform_1(%arg0: i32, %arg1: i32) -> (i32, i32) {
    %c0_i32 = arith.constant 0 : i32
    %c0_i32_0 = arith.constant 0 : i32
    %c0_i32_1 = arith.constant 0 : i32
    return %c0_i32, %c0_i32_0 : i32, i32
  }
  func.func @transform_2(%arg0: i32, %arg1: i32) -> (i32, i32) {
    %c0_i32 = arith.constant 0 : i32
    %c0_i32_0 = arith.constant 0 : i32
    %c0_i32_1 = arith.constant 0 : i32
    return %c0_i32, %c0_i32_0 : i32, i32
  }
  func.func @transform_3(%arg0: i32, %arg1: i32) -> (i32, i32, i32) {
    %c0_i32 = arith.constant 0 : i32
    %c0_i32_0 = arith.constant 0 : i32
    return %arg0, %arg1, %c0_i32 : i32, i32, i32
  }
}

</mosaic_0001>

<bundles_post_ra>
// kernel: mlp_forward.1
= control target key start
LH: loop header
LB: loop body
LE: loop exit
PB: predicated region body
PF: predicated region fallthrough
CT: control target
= control target key end

     0   :  { %s738_s12 = smov 0   ;;  %s740_s13 = smov 0   ;;  %s881_s0 = inlined_call_operand.vmem [shape: f32[2,4,256], index: 0, kind: input, shape index: {}]   ;;  %s882_s1 = inlined_call_operand.vmem [shape: f32[4,128], index: 1, kind: input, shape index: {}]   ;;  %s883_s2 = inlined_call_operand.vmem [shape: f32[1,128], index: 2, kind: input, shape index: {}]   ;;  %s884_s3 = inlined_call_operand.vmem [shape: f32[2,256,128], index: 3, kind: output, shape index: {}]  }
   0x1   :  { %s742_s14 = smov 0  }
   0x2 LB: > { %s25_s15 = sadd.s32 1, %s712_s13  ;;  %p623_p0 = scmp.ge.s32.totalorder %s716_s14, 1  ;;  %s716_s14 = sphi %s742_s14, %s13_s14   ;;  %s712_s13 = sphi %s740_s13, %s886_s13   ;;  %s708_s12 = sphi %s738_s12, %s885_s12  }
   0x3   : > { %p27_p1 = scmp.ge.s32.totalorder %s25_s15, 2  ;;  %p158_p2 = scmp.lt.s32.totalorder %s716_s14, 3 }
   0x5   : > { %s888_s15 = smov (%p27_p1, %s25_s15), 0  ;;  %p159_p3 = pnand %p623_p0, %p158_p2 }
   0x6   : > { %p191_p4 = scmp.lt.s32.totalorder (!%p159_p3), %s708_s12, 1 }
   0x7   : > { %162 = sbr.rel (%p159_p3) target bundleno = 566 (0x236), region = 32 }
   0xc   : > { %s890_s12 = smov (!%p191_p4, %s708_s12), 1  ;;  %v211_v2 = vld [vmem:[%s882_s1] sm:$0xf]  ;;  %vm383_vm0 = vcmask 1043456   ;;  %vm286_vm1 = vcmask 31744  }
   0xd   : > { %s663_s16 = sshll.u32 %s890_s12, 3  ;;  %666 = vmatpush.msk.msra.mxu2 %vm383_vm0, %v211_v2  ;;  %667 = vmatpush.msk.msra.mxu3 %vm383_vm0, %v211_v2  ;;  %s664_s22 = sshll.u32 %s890_s12, 8  ;;  %v786_v21 = vld [vmem:[%s883_s2] ss:$0 sm:$0xff] }
   0xe   : > { %s198_s19 = scalar_lea.vmem %s881_s0, %s663_s16  ;;  %628 = vmatpush.msk.msra.mxu0 %vm383_vm0, %v211_v2  ;;  %665 = vmatpush.msk.msra.mxu1 %vm383_vm0, %v211_v2  ;;  %s791_s27 = scalar_lea.vmem %s884_s3, %s664_s22 }
   0xf   : > { %v210_v0 = vld [vmem:[%s198_s19] sm:$0xff] }
  0x10   : > { %217 = vst [vmem:[#allocation1] ss:$2 sm:$0xff] %v210_v0 }
  0x17   : > { %v219_v1 = vld.sshfl [vmem:[#allocation1 + $0x8] sm:$0xff pattern:$0x75316420]  ;;  %v218_v3 = vld.sshfl [vmem:[#allocation1] sm:$0xff pattern:$0x75316420] }
  0x18   : > { %254 = vxpose.xlu0.b32.start.end [1/1] (short) %v219_v1, 128 }
  0x98   : > { %222 = vxpose.xlu0.b32.start.end [1/1] (short) %v218_v3, 128 }
  0xbc   : > { %v270_v4 = vpop.trf.xlu0 }
  0xbd   : > { %645 = vmatmul.msk.f32.vlgmr.msra.gmra.mxu2 %vm286_vm1, %v270_v4 }
  0xc4   : > { %v271_v5 = vpop.trf.xlu0 }
  0xc5   : > { %646 = vmatmul.msk.f32.gmra.mxu2 %vm286_vm1, %v271_v5 }
  0xcc   : > { %v272_v6 = vpop.trf.xlu0 }
  0xcd   : > { %647 = vmatmul.msk.f32.gmra.mxu2 %vm286_vm1, %v272_v6 }
  0xd4   : > { %v273_v7 = vpop.trf.xlu0 }
  0xd5   : > { %648 = vmatmul.msk.f32.gmra.mxu2 %vm286_vm1, %v273_v7 }
  0xdc   : > { %v274_v8 = vpop.trf.xlu0 }
  0xdd   : > { %649 = vmatmul.msk.f32.gmra.mxu2 %vm286_vm1, %v274_v8 }
  0xe4   : > { %v275_v9 = vpop.trf.xlu0 }
  0xe5   : > { %650 = vmatmul.msk.f32.gmra.mxu2 %vm286_vm1, %v275_v9 }
  0xec   : > { %v276_v10 = vpop.trf.xlu0 }
  0xed   : > { %651 = vmatmul.msk.f32.gmra.mxu2 %vm286_vm1, %v276_v10 }
  0xf4   : > { %v277_v11 = vpop.trf.xlu0 }
  0xf5   : > { %652 = vmatmul.msk.f32.gmra.mxu2 %vm286_vm1, %v277_v11 }
  0xfc   : > { %v278_v12 = vpop.trf.xlu0 }
  0xfd   : > { %653 = vmatmul.msk.f32.vlgmr.msra.gmra.mxu3 %vm286_vm1, %v278_v12 }
 0x104   : > { %v279_v13 = vpop.trf.xlu0 }
 0x105   : > { %654 = vmatmul.msk.f32.gmra.mxu3 %vm286_vm1, %v279_v13 }
 0x10c   : > { %v280_v14 = vpop.trf.xlu0 }
 0x10d   : > { %655 = vmatmul.msk.f32.gmra.mxu3 %vm286_vm1, %v280_v14 }
 0x114   : > { %v281_v15 = vpop.trf.xlu0 }
 0x115   : > { %656 = vmatmul.msk.f32.gmra.mxu3 %vm286_vm1, %v281_v15 }
 0x11c   : > { %v282_v16 = vpop.trf.xlu0 }
 0x11d   : > { %657 = vmatmul.msk.f32.gmra.mxu3 %vm286_vm1, %v282_v16 }
 0x124   : > { %v283_v17 = vpop.trf.xlu0 }
 0x125   : > { %658 = vmatmul.msk.f32.gmra.mxu3 %vm286_vm1, %v283_v17 }
 0x12c   : > { %v284_v18 = vpop.trf.xlu0 }
 0x12d   : > { %659 = vmatmul.msk.f32.gmra.mxu3 %vm286_vm1, %v284_v18 }
 0x134   : > { %v285_v19 = vpop.trf.xlu0 }
 0x135   : > { %660 = vmatmul.msk.f32.gmra.mxu3 %vm286_vm1, %v285_v19 }
 0x13c   : > { %v238_v20 = vpop.trf.xlu0 }
 0x13d   : > { %629 = vmatmul.msk.f32.vlgmr.msra.gmra.mxu0 %vm286_vm1, %v238_v20 }
 0x140   : > { %v452_v22 = vpop.f32.mrf.mxu2 }
 0x141   : > { %v453_v23 = vadd.f32 %v786_v21, %v452_v22 }
 0x143   : > { %516 = vst [vmem:[%s791_s27 + $0x80] sm:$0xff] %v453_v23 }
 0x144   : > { %v239_v24 = vpop.trf.xlu0 }
 0x145   : > { %630 = vmatmul.msk.f32.gmra.mxu0 %vm286_vm1, %v239_v24 }
 0x148   : > { %v455_v25 = vpop.f32.mrf.mxu2 }
 0x149   : > { %v456_v26 = vadd.f32 %v786_v21, %v455_v25 }
 0x14b   : > { %517 = vst [vmem:[%s791_s27 + $0x88] sm:$0xff] %v456_v26 }
 0x14c   : > { %v240_v27 = vpop.trf.xlu0 }
 0x14d   : > { %631 = vmatmul.msk.f32.gmra.mxu0 %vm286_vm1, %v240_v27 }
 0x150   : > { %v458_v28 = vpop.f32.mrf.mxu2 }
 0x151   : > { %v459_v29 = vadd.f32 %v786_v21, %v458_v28 }
 0x153   : > { %518 = vst [vmem:[%s791_s27 + $0x90] sm:$0xff] %v459_v29 }
 0x154   : > { %v241_v30 = vpop.trf.xlu0 }
 0x155   : > { %632 = vmatmul.msk.f32.gmra.mxu0 %vm286_vm1, %v241_v30 }
 0x158   : > { %v461_v31 = vpop.f32.mrf.mxu2 }
 0x159   : > { %v462_v32 = vadd.f32 %v786_v21, %v461_v31 }
 0x15b   : > { %519 = vst [vmem:[%s791_s27 + $0x98] sm:$0xff] %v462_v32 }
 0x15c   : > { %v242_v33 = vpop.trf.xlu0 }
 0x15d   : > { %633 = vmatmul.msk.f32.gmra.mxu0 %vm286_vm1, %v242_v33 }
 0x160   : > { %v464_v34 = vpop.f32.mrf.mxu2 }
 0x161   : > { %v465_v35 = vadd.f32 %v786_v21, %v464_v34 }
 0x163   : > { %520 = vst [vmem:[%s791_s27 + $0xa0] sm:$0xff] %v465_v35 }
 0x164   : > { %v243_v36 = vpop.trf.xlu0 }
 0x165   : > { %634 = vmatmul.msk.f32.gmra.mxu0 %vm286_vm1, %v243_v36 }
 0x168   : > { %v467_v37 = vpop.f32.mrf.mxu2 }
 0x169   : > { %v468_v38 = vadd.f32 %v786_v21, %v467_v37 }
 0x16b   : > { %521 = vst [vmem:[%s791_s27 + $0xa8] sm:$0xff] %v468_v38 }
 0x16c   : > { %v244_v39 = vpop.trf.xlu0 }
 0x16d   : > { %635 = vmatmul.msk.f32.gmra.mxu0 %vm286_vm1, %v244_v39 }
 0x170   : > { %v470_v40 = vpop.f32.mrf.mxu2 }
 0x171   : > { %v471_v41 = vadd.f32 %v786_v21, %v470_v40 }
 0x173   : > { %522 = vst [vmem:[%s791_s27 + $0xb0] sm:$0xff] %v471_v41 }
 0x174   : > { %v245_v42 = vpop.trf.xlu0 }
 0x175   : > { %636 = vmatmul.msk.f32.gmra.mxu0 %vm286_vm1, %v245_v42 }
 0x178   : > { %v473_v43 = vpop.f32.mrf.mxu2 }
 0x179   : > { %v474_v44 = vadd.f32 %v786_v21, %v473_v43 }
 0x17b   : > { %523 = vst [vmem:[%s791_s27 + $0xb8] sm:$0xff] %v474_v44 }
 0x17c   : > { %v246_v45 = vpop.trf.xlu0 }
 0x17d   : > { %637 = vmatmul.msk.f32.vlgmr.msra.gmra.mxu1 %vm286_vm1, %v246_v45 }
 0x180   : > { %v476_v46 = vpop.f32.mrf.mxu3 }
 0x181   : > { %v477_v47 = vadd.f32 %v786_v21, %v476_v46 }
 0x183   : > { %524 = vst [vmem:[%s791_s27 + $0xc0] sm:$0xff] %v477_v47 }
 0x184   : > { %v247_v48 = vpop.trf.xlu0 }
 0x185   : > { %638 = vmatmul.msk.f32.gmra.mxu1 %vm286_vm1, %v247_v48 }
 0x188   : > { %v479_v49 = vpop.f32.mrf.mxu3 }
 0x189   : > { %v480_v50 = vadd.f32 %v786_v21, %v479_v49 }
 0x18b   : > { %525 = vst [vmem:[%s791_s27 + $0xc8] sm:$0xff] %v480_v50 }
 0x18c   : > { %v248_v51 = vpop.trf.xlu0 }
 0x18d   : > { %639 = vmatmul.msk.f32.gmra.mxu1 %vm286_vm1, %v248_v51 }
 0x190   : > { %v482_v52 = vpop.f32.mrf.mxu3 }
 0x191   : > { %v483_v53 = vadd.f32 %v786_v21, %v482_v52 }
 0x193   : > { %526 = vst [vmem:[%s791_s27 + $0xd0] sm:$0xff] %v483_v53 }
 0x194   : > { %v249_v54 = vpop.trf.xlu0 }
 0x195   : > { %640 = vmatmul.msk.f32.gmra.mxu1 %vm286_vm1, %v249_v54 }
 0x198   : > { %v485_v55 = vpop.f32.mrf.mxu3 }
 0x199   : > { %v486_v56 = vadd.f32 %v786_v21, %v485_v55 }
 0x19b   : > { %527 = vst [vmem:[%s791_s27 + $0xd8] sm:$0xff] %v486_v56 }
 0x19c   : > { %v250_v57 = vpop.trf.xlu0 }
 0x19d   : > { %641 = vmatmul.msk.f32.gmra.mxu1 %vm286_vm1, %v250_v57 }
 0x1a0   : > { %v488_v58 = vpop.f32.mrf.mxu3 }
 0x1a1   : > { %v489_v59 = vadd.f32 %v786_v21, %v488_v58 }
 0x1a3   : > { %528 = vst [vmem:[%s791_s27 + $0xe0] sm:$0xff] %v489_v59 }
 0x1a4   : > { %v251_v60 = vpop.trf.xlu0 }
 0x1a5   : > { %642 = vmatmul.msk.f32.gmra.mxu1 %vm286_vm1, %v251_v60 }
 0x1a8   : > { %v491_v61 = vpop.f32.mrf.mxu3 }
 0x1a9   : > { %v492_v62 = vadd.f32 %v786_v21, %v491_v61 }
 0x1ab   : > { %529 = vst [vmem:[%s791_s27 + $0xe8] sm:$0xff] %v492_v62 }
 0x1ac   : > { %v252_v63 = vpop.trf.xlu0 }
 0x1ad   : > { %643 = vmatmul.msk.f32.gmra.mxu1 %vm286_vm1, %v252_v63 }
 0x1b0   : > { %v494_v0 = vpop.f32.mrf.mxu3 }
 0x1b1   : > { %v495_v1 = vadd.f32 %v786_v21, %v494_v0 }
 0x1b3   : > { %530 = vst [vmem:[%s791_s27 + $0xf0] sm:$0xff] %v495_v1 }
 0x1b4   : > { %v253_v2 = vpop.trf.xlu0 }
 0x1b5   : > { %644 = vmatmul.msk.f32.gmra.mxu1 %vm286_vm1, %v253_v2 }
 0x1b8   : > { %v497_v3 = vpop.f32.mrf.mxu3 }
 0x1b9   : > { %v498_v4 = vadd.f32 %v786_v21, %v497_v3 }
 0x1ba   : > { %v404_v5 = vpop.f32.mrf.mxu0 }
 0x1bb   : > { %531 = vst [vmem:[%s791_s27 + $0xf8] sm:$0xff] %v498_v4  ;;  %v405_v6 = vadd.f32 %v786_v21, %v404_v5 }
 0x1bd   : > { %500 = vst [vmem:[%s791_s27] sm:$0xff] %v405_v6 }
 0x1c2   : > { %v407_v7 = vpop.f32.mrf.mxu0 }
 0x1c3   : > { %v408_v8 = vadd.f32 %v786_v21, %v407_v7 }
 0x1c5   : > { %501 = vst [vmem:[%s791_s27 + $0x8] sm:$0xff] %v408_v8 }
 0x1ca   : > { %v410_v9 = vpop.f32.mrf.mxu0 }
 0x1cb   : > { %v411_v10 = vadd.f32 %v786_v21, %v410_v9 }
 0x1cd   : > { %502 = vst [vmem:[%s791_s27 + $0x10] sm:$0xff] %v411_v10 }
 0x1d2   : > { %v413_v11 = vpop.f32.mrf.mxu0 }
 0x1d3   : > { %v414_v12 = vadd.f32 %v786_v21, %v413_v11 }
 0x1d5   : > { %503 = vst [vmem:[%s791_s27 + $0x18] sm:$0xff] %v414_v12 }
 0x1da   : > { %v416_v13 = vpop.f32.mrf.mxu0 }
 0x1db   : > { %v417_v14 = vadd.f32 %v786_v21, %v416_v13 }
 0x1dd   : > { %504 = vst [vmem:[%s791_s27 + $0x20] sm:$0xff] %v417_v14 }
 0x1e2   : > { %v419_v15 = vpop.f32.mrf.mxu0 }
 0x1e3   : > { %v420_v16 = vadd.f32 %v786_v21, %v419_v15 }
 0x1e5   : > { %505 = vst [vmem:[%s791_s27 + $0x28] sm:$0xff] %v420_v16 }
 0x1ea   : > { %v422_v17 = vpop.f32.mrf.mxu0 }
 0x1eb   : > { %v423_v18 = vadd.f32 %v786_v21, %v422_v17 }
 0x1ed   : > { %506 = vst [vmem:[%s791_s27 + $0x30] sm:$0xff] %v423_v18 }
 0x1f2   : > { %v425_v19 = vpop.f32.mrf.mxu0 }
 0x1f3   : > { %v426_v20 = vadd.f32 %v786_v21, %v425_v19 }
 0x1f5   : > { %507 = vst [vmem:[%s791_s27 + $0x38] sm:$0xff] %v426_v20 }
 0x1fa   : > { %v428_v22 = vpop.f32.mrf.mxu1 }
 0x1fb   : > { %v429_v23 = vadd.f32 %v786_v21, %v428_v22 }
 0x1fd   : > { %508 = vst [vmem:[%s791_s27 + $0x40] sm:$0xff] %v429_v23 }
 0x202   : > { %v431_v24 = vpop.f32.mrf.mxu1 }
 0x203   : > { %v432_v25 = vadd.f32 %v786_v21, %v431_v24 }
 0x205   : > { %509 = vst [vmem:[%s791_s27 + $0x48] sm:$0xff] %v432_v25 }
 0x20a   : > { %v434_v26 = vpop.f32.mrf.mxu1 }
 0x20b   : > { %v435_v27 = vadd.f32 %v786_v21, %v434_v26 }
 0x20d   : > { %510 = vst [vmem:[%s791_s27 + $0x50] sm:$0xff] %v435_v27 }
 0x212   : > { %v437_v28 = vpop.f32.mrf.mxu1 }
 0x213   : > { %v438_v29 = vadd.f32 %v786_v21, %v437_v28 }
 0x215   : > { %511 = vst [vmem:[%s791_s27 + $0x58] sm:$0xff] %v438_v29 }
 0x21a   : > { %v440_v30 = vpop.f32.mrf.mxu1 }
 0x21b   : > { %v441_v31 = vadd.f32 %v786_v21, %v440_v30 }
 0x21d   : > { %512 = vst [vmem:[%s791_s27 + $0x60] sm:$0xff] %v441_v31 }
 0x222   : > { %v443_v32 = vpop.f32.mrf.mxu1 }
 0x223   : > { %v444_v33 = vadd.f32 %v786_v21, %v443_v32 }
 0x225   : > { %513 = vst [vmem:[%s791_s27 + $0x68] sm:$0xff] %v444_v33 }
 0x22a   : > { %v446_v34 = vpop.f32.mrf.mxu1 }
 0x22b   : > { %v447_v35 = vadd.f32 %v786_v21, %v446_v34 }
 0x22d   : > { %514 = vst [vmem:[%s791_s27 + $0x70] sm:$0xff] %v447_v35 }
 0x232   : > { %v449_v36 = vpop.f32.mrf.mxu1 }
 0x233   : > { %v450_v37 = vadd.f32 %v786_v21, %v449_v36 }
 0x235   : > { %515 = vst [vmem:[%s791_s27 + $0x78] sm:$0xff] %v450_v37 }
 0x236 PF: > { %s13_s14 = sadd.s32 1, %s716_s14   ;;  %s885_s12 = smov %s712_s13 }
 0x237   : > { %p10_p5 = scmp.ge.s32.totalorder %s13_s14, 4   ;;  %s886_s13 = smov %s888_s15 }
 0x239   :  { %12 = sbr.rel (!%p10_p5) target bundleno = 2 (0x2), region = 62 }

</bundles_post_ra>
